<compile_context>
chip_gen: v7x
topology: tpu7x:2x2x1
jax: 0.10.0
libtpu: 0.0.40
codegen_flags: <defaults>
</compile_context>

<pallas_src>
import functools

import jax
import jax.numpy as jnp
from jax.experimental import pallas as pl
from jax.experimental.pallas import tpu as pltpu


# ----------------------------- kernels -------------------------------------


def _layernorm_rows_kernel(x_ref, a_ref, b_ref, o_ref, *, eps, inv_nm1):
    """Row-major layout: features on the 128-lane axis (F % 128 == 0)."""
    x = x_ref[...].astype(jnp.float32)                          # (tm, F)
    mean = jnp.mean(x, axis=-1, keepdims=True)                  # (tm, 1)
    diff = x - mean
    var = jnp.sum(diff * diff, axis=-1, keepdims=True) * inv_nm1
    inv = pl.reciprocal(jnp.sqrt(var) + eps, approx=False)      # (tm, 1), exact
    o_ref[...] = ((diff * inv) * a_ref[...] + b_ref[...]).astype(o_ref.dtype)


def _layernorm_cols_kernel(x_ref, a_ref, b_ref, o_ref, *, eps, inv_nm1):
    """Transposed lane-dense layout: rows on the 128-lane axis, reduce over sublanes."""
    x = x_ref[...].astype(jnp.float32)                          # (F, tc)
    mean = jnp.mean(x, axis=0, keepdims=True)                   # (1, tc)
    diff = x - mean
    var = jnp.sum(diff * diff, axis=0, keepdims=True) * inv_nm1
    inv = pl.reciprocal(jnp.sqrt(var) + eps, approx=False)      # (1, tc), exact
    o_ref[...] = ((diff * inv) * a_ref[...] + b_ref[...]).astype(o_ref.dtype)


# --------------------------- tiling helpers ---------------------------------


def _vmem_budget():
    """Generation-aware (tile_bytes, vmem_limit_bytes)."""
    try:
        cap = int(pltpu.get_tpu_info().vmem_capacity_bytes)
    except Exception:
        cap = 64 * 1024 * 1024  # conservative fallback: v7x per-TC VMEM
    # ~4x tile resident (2 inputs + 2 outputs double-buffered); keep within ~half VMEM.
    target_tile = min(max(cap // 8, 2 * 1024 * 1024), 16 * 1024 * 1024)
    vmem_limit = min((cap * 3) // 4, 100 * 1024 * 1024)
    return target_tile, vmem_limit


def _pick_block_rows(rows, feat, itemsize, target_tile_bytes, max_block_rows=32768):
    """Row-major path: largest sublane-aligned row tile within the budget,
    capped so the grid has >= 4 (else >= 2) steps when rows allow."""
    align = 8 if itemsize >= 4 else (16 if itemsize == 2 else 32)
    rows_up = -(-rows // align) * align
    br = target_tile_bytes // max(feat * itemsize, 1)
    br = max(align, min(br, max_block_rows, rows_up))
    br = (br // align) * align
    for min_steps in (4, 2):
        cap = (rows // (min_steps * align)) * align
        if cap >= align:
            br = min(br, cap)
            break
    return max(br, align)


def _pick_block_cols(rows, feat, itemsize, target_tile_bytes, max_block_cols=32768):
    """Transposed path: lane-aligned (128) column tile, same >=4/>=2 step cap."""
    lane = 128
    if rows <= lane:
        return rows  # single full-extent block (last dim must equal array dim)
    bc = target_tile_bytes // max(feat * itemsize, 1)
    bc = max(lane, min(bc, max_block_cols, (rows // lane) * lane))
    bc = (bc // lane) * lane
    for min_steps in (4, 2):
        cap = (rows // (min_steps * lane)) * lane
        if cap >= lane:
            bc = min(bc, cap)
            break
    return max(bc, lane)


# ------------------------------ wrapper -------------------------------------


def layer_norm(x, a, b, eps=1e-6, block_rows=None, block_cols=None):
    """x: (..., F); a, b: (F,). Returns same shape/dtype as x."""
    orig_shape = x.shape
    feat = orig_shape[-1]
    rows = 1
    for d in orig_shape[:-1]:
        rows *= d
    x2 = x.reshape(rows, feat)
    itemsize = x2.dtype.itemsize
    target_tile_bytes, vmem_limit = _vmem_budget()
    # torch.std default is unbiased -> 1/(N-1). feat==1 guard diverges from
    # torch's NaN in that degenerate case (documented above).
    inv_nm1 = 1.0 / float(max(feat - 1, 1))

    if feat % 128 == 0:
        # Features already fill whole lanes -> unmasked stores; no transpose traffic.
        a2 = a.astype(jnp.float32).reshape(1, feat)
        b2 = b.astype(jnp.float32).reshape(1, feat)
        if block_rows is None:
            block_rows = _pick_block_rows(rows, feat, itemsize, target_tile_bytes)
        kernel = functools.partial(
            _layernorm_rows_kernel, eps=float(eps), inv_nm1=inv_nm1)
        out = pl.pallas_call(
            kernel,
            out_shape=jax.ShapeDtypeStruct((rows, feat), x.dtype),
            grid_spec=pltpu.PrefetchScalarGridSpec(
                num_scalar_prefetch=0,
                grid=(pl.cdiv(rows, block_rows),),
                in_specs=[
                    pl.BlockSpec((block_rows, feat), lambda i: (i, 0)),
                    pl.BlockSpec((1, feat), lambda i: (0, 0)),
                    pl.BlockSpec((1, feat), lambda i: (0, 0)),
                ],
                out_specs=pl.BlockSpec((block_rows, feat), lambda i: (i, 0)),
            ),
            compiler_params=pltpu.CompilerParams(
                dimension_semantics=("parallel",),
                vmem_limit_bytes=vmem_limit,
            ),
        )(x2, a2, b2)
        return out.reshape(orig_shape)

    # Lane-dense transposed path for F not a multiple of 128 (e.g. F=32):
    # present (F, rows) so rows map to lanes; reduction runs over sublanes.
    xt = x2.T                                           # wrapper-side layout plumbing
    a2 = a.astype(jnp.float32).reshape(feat, 1)
    b2 = b.astype(jnp.float32).reshape(feat, 1)
    if block_cols is None:
        block_cols = _pick_block_cols(rows, feat, itemsize, target_tile_bytes)
    kernel = functools.partial(
        _layernorm_cols_kernel, eps=float(eps), inv_nm1=inv_nm1)
    out_t = pl.pallas_call(
        kernel,
        out_shape=jax.ShapeDtypeStruct((feat, rows), x.dtype),
        grid_spec=pltpu.PrefetchScalarGridSpec(
            num_scalar_prefetch=0,
            grid=(pl.cdiv(rows, block_cols),),
            in_specs=[
                pl.BlockSpec((feat, block_cols), lambda i: (0, i)),
                pl.BlockSpec((feat, 1), lambda i: (0, 0)),
                pl.BlockSpec((feat, 1), lambda i: (0, 0)),
            ],
            out_specs=pl.BlockSpec((feat, block_cols), lambda i: (0, i)),
        ),
        compiler_params=pltpu.CompilerParams(
            dimension_semantics=("parallel",),
            vmem_limit_bytes=vmem_limit,
        ),
    )(xt, a2, b2)
    return out_t.T.reshape(orig_shape)


if __name__ == "__main__":
    key = jax.random.PRNGKey(0)
    B, S, F = 2, 8, 32
    x = jax.random.normal(key, (B, S, F), dtype=jnp.float32)

    # Deterministic parameter init matching nn.Parameter(torch.ones/zeros).
    a = jnp.ones((F,), dtype=jnp.float32)
    b = jnp.zeros((F,), dtype=jnp.float32)
    eps = 1e-6

    out = layer_norm(x, a, b, eps)
    out = jax.block_until_ready(out)

    # Reference check (pure JAX, mirrors the PyTorch forward exactly).
    mean = jnp.mean(x, axis=-1, keepdims=True)
    var = jnp.sum((x - mean) ** 2, axis=-1, keepdims=True) / (F - 1)
    std = jnp.sqrt(var)
    ref = a * (x - mean) / (std + eps) + b
    assert jnp.allclose(out, ref, atol=1e-5, rtol=1e-5), "mismatch vs reference"

    print("KERNEL_OK")
</pallas_src>

<mosaic_0001>
module attributes {stable_mosaic.version = 11 : i64} {
  func.func @_layernorm_cols_kernel(%arg0: i32, %arg1: memref<32x16xf32, #tpu.memory_space<vmem>>, %arg2: memref<32x1xf32, #tpu.memory_space<vmem>>, %arg3: memref<32x1xf32, #tpu.memory_space<vmem>>, %arg4: memref<32x16xf32, #tpu.memory_space<vmem>>) attributes {dimension_semantics = [#tpu.dimension_semantics<parallel>], iteration_bounds = array<i64: 1>, scalar_prefetch = 0 : i64, scratch_operands = 0 : i64, tpu.core_type = #tpu.core_type<tc>, window_params = [{transform_indices = @transform_0, window_bounds = array<i64: 32, 16>}, {pipeline_mode = #tpu.pipeline_mode<synchronous>, transform_indices = @transform_1, window_bounds = array<i64: 32, 1>}, {pipeline_mode = #tpu.pipeline_mode<synchronous>, transform_indices = @transform_2, window_bounds = array<i64: 32, 1>}, {transform_indices = @transform_3, window_bounds = array<i64: 32, 16>}]} {
    %c0 = arith.constant 0 : index
    %c0_0 = arith.constant 0 : index
    %0 = vector.load %arg1[%c0, %c0_0] : memref<32x16xf32, #tpu.memory_space<vmem>>, vector<32x16xf32>
    %cst = arith.constant dense<0.000000e+00> : vector<16xf32>
    %1 = vector.multi_reduction <add>, %0, %cst [0] : vector<32x16xf32> to vector<16xf32>
    %2 = vector.shape_cast %1 : vector<16xf32> to vector<1x16xf32>
    %cst_1 = arith.constant 3.200000e+01 : f32
    %3 = vector.broadcast %cst_1 : f32 to vector<1x16xf32>
    %4 = arith.divf %2, %3 : vector<1x16xf32>
    %5 = vector.broadcast %4 : vector<1x16xf32> to vector<32x16xf32>
    %6 = arith.subf %0, %5 : vector<32x16xf32>
    %7 = arith.mulf %6, %6 : vector<32x16xf32>
    %cst_2 = arith.constant dense<0.000000e+00> : vector<16xf32>
    %8 = vector.multi_reduction <add>, %7, %cst_2 [0] : vector<32x16xf32> to vector<16xf32>
    %9 = vector.shape_cast %8 : vector<16xf32> to vector<1x16xf32>
    %cst_3 = arith.constant 0.0322580636 : f32
    %10 = vector.broadcast %cst_3 : f32 to vector<1x16xf32>
    %11 = arith.mulf %9, %10 : vector<1x16xf32>
    %12 = math.sqrt %11 : vector<1x16xf32>
    %cst_4 = arith.constant 9.99999997E-7 : f32
    %13 = vector.broadcast %cst_4 : f32 to vector<1x16xf32>
    %14 = arith.addf %12, %13 : vector<1x16xf32>
    %15 = tpu.reciprocal %14 : vector<1x16xf32> -> vector<1x16xf32>
    %16 = vector.broadcast %15 : vector<1x16xf32> to vector<32x16xf32>
    %17 = arith.mulf %6, %16 : vector<32x16xf32>
    %c0_5 = arith.constant 0 : index
    %c0_6 = arith.constant 0 : index
    %18 = vector.load %arg2[%c0_5, %c0_6] : memref<32x1xf32, #tpu.memory_space<vmem>>, vector<32x1xf32>
    %19 = vector.broadcast %18 : vector<32x1xf32> to vector<32x16xf32>
    %20 = arith.mulf %17, %19 : vector<32x16xf32>
    %c0_7 = arith.constant 0 : index
    %c0_8 = arith.constant 0 : index
    %21 = vector.load %arg3[%c0_7, %c0_8] : memref<32x1xf32, #tpu.memory_space<vmem>>, vector<32x1xf32>
    %22 = vector.broadcast %21 : vector<32x1xf32> to vector<32x16xf32>
    %23 = arith.addf %20, %22 : vector<32x16xf32>
    %c0_9 = arith.constant 0 : index
    %c0_10 = arith.constant 0 : index
    %24 = vector.load %arg4[%c0_9, %c0_10] : memref<32x16xf32, #tpu.memory_space<vmem>>, vector<32x16xf32>
    tpu.vector_store %arg4[%c0_9, %c0_10], %23 {strides = array<i32>} : memref<32x16xf32, #tpu.memory_space<vmem>>, vector<32x16xf32>,
    return
  }
  func.func @transform_0(%arg0: i32) -> (i32, i32) {
    %c0_i32 = arith.constant 0 : i32
    %c0_i32_0 = arith.constant 0 : i32
    return %c0_i32, %arg0 : i32, i32
  }
  func.func @transform_1(%arg0: i32) -> (i32, i32) {
    %c0_i32 = arith.constant 0 : i32
    %c0_i32_0 = arith.constant 0 : i32
    %c0_i32_1 = arith.constant 0 : i32
    return %c0_i32, %c0_i32_0 : i32, i32
  }
  func.func @transform_2(%arg0: i32) -> (i32, i32) {
    %c0_i32 = arith.constant 0 : i32
    %c0_i32_0 = arith.constant 0 : i32
    %c0_i32_1 = arith.constant 0 : i32
    return %c0_i32, %c0_i32_0 : i32, i32
  }
  func.func @transform_3(%arg0: i32) -> (i32, i32) {
    %c0_i32 = arith.constant 0 : i32
    %c0_i32_0 = arith.constant 0 : i32
    return %c0_i32, %arg0 : i32, i32
  }
}

</mosaic_0001>

<bundles_post_ra>
// kernel: tpu_custom_call.1
= control target key start
LH: loop header
LB: loop body
LE: loop exit
PB: predicated region body
PF: predicated region fallthrough
CT: control target
= control target key end

     0   :  { %v140_v0 = vmov 0   ;;  %vm18_vm0 = vcmask 130048   ;;  %s221_s1 = inlined_call_operand.vmem [shape: f32[32,1], index: 1, kind: input, shape index: {}]   ;;  %s222_s0 = inlined_call_operand.vmem [shape: f32[32,16], index: 0, kind: input, shape index: {}]   ;;  %s223_s2 = inlined_call_operand.vmem [shape: f32[32,1], index: 2, kind: input, shape index: {}]   ;;  %s224_s3 = inlined_call_operand.vmem [shape: f32[32,16], index: 3, kind: output, shape index: {}]  }
   0x1   :  { %135 = vset.pattern.permute.xlu1 %v140_v0  ;;  %134 = vset.pattern.permute.xlu0 %v140_v0  ;;  %v71_v1 = vld [vmem:[%s221_s1 + $0x10] sm:$0xff]  ;;  %v69_v2 = vld [vmem:[%s221_s1] sm:$0xff]  ;;  %v72_v3 = vld [vmem:[%s221_s1 + $0x18] sm:$0xff] }
   0x2   :  { %85 = vperm.xlu1 %135, %v71_v1   ;;  %75 = vperm.xlu0 %134, %v69_v2   ;;  %v70_v4 = vld [vmem:[%s221_s1 + $0x8] sm:$0xff]  ;;  %v14_v5 = vld [vmem:[%s222_s0] sm:$0xff]  ;;  %v16_v7 = vld [vmem:[%s222_s0 + $0x10] sm:$0xff] }
   0x3   :  { %v15_v6 = vld [vmem:[%s222_s0 + $0x8] sm:$0xff]  ;;  %v17_v8 = vld [vmem:[%s222_s0 + $0x18] sm:$0xff]  ;;  %v19_v9 = vsel %vm18_vm0, %v14_v5, 0.0  ;;  %v22_v11 = vsel %vm18_vm0, %v16_v7, 0.0  ;;  %v97_v14 = vld [vmem:[%s223_s2] sm:$0xff] }
   0x4   :  { %v20_v10 = vsel %vm18_vm0, %v15_v6, 0.0  ;;  %v98_v13 = vld [vmem:[%s223_s2 + $0x8] sm:$0xff]  ;;  %v24_v15 = vsel %vm18_vm0, %v17_v8, 0.0  ;;  %v100_v18 = vld [vmem:[%s223_s2 + $0x18] sm:$0xff]  ;;  %v99_v19 = vld [vmem:[%s223_s2 + $0x10] sm:$0xff] }
   0x5   :  { %v21_v12 = vadd.f32 %v20_v10, %v19_v9 }
   0x6   :  { %90 = vperm.xlu1 %135, %v72_v3   ;;  %80 = vperm.xlu0 %134, %v70_v4  }
   0x7   :  { %v23_v16 = vadd.f32 %v22_v11, %v21_v12 }
   0x9   :  { %v25_v17 = vadd.f32 %v24_v15, %v23_v16 }
   0xa   :  { %108 = vperm.xlu1 %135, %v98_v13   ;;  %103 = vperm.xlu0 %134, %v97_v14  }
   0xb   :  { %v26_v20 = vrot.slane %v25_v17, 4 }
   0xd   :  { %v27_v21 = vadd.f32 %v26_v20, %v25_v17 }
   0xe   :  { %118 = vperm.xlu1 %135, %v100_v18   ;;  %113 = vperm.xlu0 %134, %v99_v19  }
   0xf   :  { %v28_v22 = vrot.slane %v27_v21, 2 }
  0x11   :  { %v29_v23 = vadd.f32 %v28_v22, %v27_v21 }
  0x13   :  { %v30_v24 = vrot.slane %v29_v23, 1 }
  0x15   :  { %v31_v25 = vadd.f32 %v30_v24, %v29_v23 }
  0x17   :  { %v33_v26 = vmul.f32 0.03125, %v31_v25 }
  0x19   :  { %v34_v27 = vsub.f32 %v14_v5, %v33_v26  ;;  %v35_v28 = vsub.f32 %v15_v6, %v33_v26  ;;  %v36_v29 = vsub.f32 %v16_v7, %v33_v26  ;;  %v37_v32 = vsub.f32 %v17_v8, %v33_v26 }
  0x1b   :  { %v38_v30 = vmul.f32 %v34_v27, %v34_v27  ;;  %v39_v31 = vmul.f32 %v35_v28, %v35_v28  ;;  %v40_v33 = vmul.f32 %v36_v29, %v36_v29  ;;  %v41_v37 = vmul.f32 %v37_v32, %v37_v32 }
  0x1d   :  { %v42_v34 = vsel %vm18_vm0, %v38_v30, 0.0  ;;  %v43_v35 = vsel %vm18_vm0, %v39_v31, 0.0  ;;  %v45_v38 = vsel %vm18_vm0, %v40_v33, 0.0  ;;  %v47_v40 = vsel %vm18_vm0, %v41_v37, 0.0 }
  0x1e   :  { %v44_v36 = vadd.f32 %v43_v35, %v42_v34 }
  0x20   :  { %v46_v39 = vadd.f32 %v45_v38, %v44_v36 }
  0x22   :  { %v48_v41 = vadd.f32 %v47_v40, %v46_v39 }
  0x24   :  { %v49_v42 = vrot.slane %v48_v41, 4 }
  0x26   :  { %v50_v43 = vadd.f32 %v49_v42, %v48_v41 }
  0x28   :  { %v51_v44 = vrot.slane %v50_v43, 2 }
  0x2a   :  { %v52_v45 = vadd.f32 %v51_v44, %v50_v43 }
  0x2c   :  { %v53_v46 = vrot.slane %v52_v45, 1 }
  0x2e   :  { %v54_v47 = vadd.f32 %v53_v46, %v52_v45 }
  0x30   :  { %v55_v48 = vmul.f32 0.032258064, %v54_v47 }
  0x32   :  { %136 = vrsqrt.f32 %v55_v48  ;;  %vm58_vm1 = vcmp.eq.f32.partialorder %v55_v48, inf  ;;  %v61_v51 = vand.u32 2147483648, %v55_v48  ;;  %vm60_vm2 = vcmp.eq.f32.partialorder %v55_v48, 0.0 }
  0x3c   :  { %v137_v49 = vpop.eup %136 }
  0x3d   :  { %v57_v50 = vmul.f32 %v137_v49, %v55_v48 }
  0x3f   :  { %v59_v52 = vsel %vm58_vm1, %v55_v48, %v57_v50 }
  0x40   :  { %v62_v53 = vsel %vm60_vm2, %v61_v51, %v59_v52 }
  0x41   :  { %v63_v54 = vadd.f32 1e-06, %v62_v53 }
  0x43   :  { %138 = vrcp.f32 %v63_v54 }
  0x4d   :  { %v139_v55 = vpop.eup %138 }
  0x4e   :  { %v65_v58 = vmul.f32 %v139_v55, %v34_v27  ;;  %v66_v59 = vmul.f32 %v139_v55, %v35_v28  ;;  %v67_v62 = vmul.f32 %v139_v55, %v36_v29  ;;  %v68_v0 = vmul.f32 %v139_v55, %v37_v32 }
  0x81   :  { %v86_v56 = vpop.permute.xlu1 %85  ;;  %v76_v57 = vpop.permute.xlu0 %75 }
  0x82   :  { %v93_v63 = vmul.f32 %v76_v57, %v65_v58  ;;  %v95_v6 = vmul.f32 %v86_v56, %v67_v62 }
  0x85   :  { %v91_v60 = vpop.permute.xlu1 %90  ;;  %v81_v61 = vpop.permute.xlu0 %80 }
  0x86   :  { %v94_v1 = vmul.f32 %v81_v61, %v66_v59  ;;  %v96_v7 = vmul.f32 %v91_v60, %v68_v0 }
  0x89   :  { %v109_v2 = vpop.permute.xlu1 %108  ;;  %v104_v3 = vpop.permute.xlu0 %103 }
  0x8a   :  { %v122_v4 = vadd.f32 %v109_v2, %v94_v1  ;;  %v121_v5 = vadd.f32 %v104_v3, %v93_v63 }
  0x8c   :  { %126 = vst.msk [vmem:[%s224_s3 + $0x8] sm:$0xff] %vm18_vm0, %v122_v4  ;;  %125 = vst.msk [vmem:[%s224_s3] sm:$0xff] %vm18_vm0, %v121_v5 }
  0x8d   :  { %v119_v8 = vpop.permute.xlu1 %118  ;;  %v114_v9 = vpop.permute.xlu0 %113 }
  0x8e   :  { %v124_v10 = vadd.f32 %v119_v8, %v96_v7  ;;  %v123_v11 = vadd.f32 %v114_v9, %v95_v6 }
  0x90   :  { %128 = vst.msk [vmem:[%s224_s3 + $0x18] sm:$0xff] %vm18_vm0, %v124_v10  ;;  %127 = vst.msk [vmem:[%s224_s3 + $0x10] sm:$0xff] %vm18_vm0, %v123_v11 }

</bundles_post_ra>
